<compile_context>
chip_gen: v7x
topology: tpu7x:2x2x1
jax: 0.10.0
libtpu: 0.0.40
codegen_flags: <defaults>
</compile_context>

<pallas_src>
import functools

import jax
import jax.numpy as jnp
from jax.experimental import pallas as pl
from jax.experimental.pallas import tpu as pltpu


def srupp_attention_kernel(alpha_ref, x_ref, w1t_ref, w2t_ref, w3t_ref,
                           out_ref, *, num_heads: int, compute_dtype):
    """One batch tile per grid step; heads handled via batched contractions."""
    Bt, L, Din = x_ref.shape
    P = w1t_ref.shape[1]
    H = num_heads
    hd = P // H
    scaling = float(hd) ** (-0.5)
    alpha = alpha_ref[0]                          # rezero alpha (f32, SMEM)

    # ---- projections: full contraction depth, M = Bt*L rows fills the MXU --
    x = x_ref[...].astype(compute_dtype).reshape(Bt * L, Din)
    w1t = w1t_ref[...]                            # (Din, P)    bf16
    w2t = w2t_ref[...]                            # (P, 2P)     bf16
    w3t = w3t_ref[...]                            # (P, Dout)   bf16

    z = jnp.dot(x, w1t, preferred_element_type=jnp.float32)       # (Bt*L, P)
    kv = jnp.dot(z.astype(compute_dtype), w2t,
                 preferred_element_type=jnp.float32)               # (Bt*L, 2P)

    # ---- head-major (Bt*H, L, hd) views; lane-tile aligned when hd%128==0 --
    def head_major(m, off):
        return jnp.stack(
            [m[b * L:(b + 1) * L, off + h * hd: off + (h + 1) * hd]
             for b in range(Bt) for h in range(H)], axis=0)

    q3 = (head_major(z, 0) * scaling).astype(compute_dtype)        # (Bt*H,L,hd)
    k3 = head_major(kv, 0).astype(compute_dtype)
    v3 = head_major(kv, P).astype(compute_dtype)

    # ---- attention: f32 scores, normalization deferred past the PV matmul --
    s = jnp.einsum('bld,bsd->bls', q3, k3,
                   preferred_element_type=jnp.float32)             # (Bt*H,L,L)
    s = s - jnp.max(s, axis=-1, keepdims=True)                     # keeps p<=1
    p = jnp.exp(s)
    inv = pl.reciprocal(jnp.sum(p, axis=-1, keepdims=True), approx=True)
    o3 = jnp.einsum('bls,bsd->bld', p.astype(compute_dtype), v3,
                    preferred_element_type=jnp.float32)            # (Bt*H,L,hd)
    # softmax 1/rowsum folded into the rezero scale: O(Bt*H*L*hd) multiply
    # instead of scaling the O(Bt*H*L*L) probability tensor.
    o3 = o3 * (alpha * inv)

    # ---- merge heads back onto the lane axis, residual, single projection --
    attn = jnp.concatenate(
        [jnp.concatenate([o3[b * H + h] for h in range(H)], axis=-1)
         for b in range(Bt)], axis=0) + z                          # (Bt*L, P)
    out = jnp.dot(attn.astype(compute_dtype), w3t,
                  preferred_element_type=jnp.float32)              # (Bt*L,Dout)
    out_ref[...] = out.reshape(Bt, L, -1).astype(out_ref.dtype)


def _vmem_limit_bytes():
    # Generation-aware VMEM budget: ~3/4 of physical, capped at 100 MiB
    # (v5e/v6e: 128 MiB -> 96 MiB; v7x: 64 MiB -> 48 MiB).
    try:
        cap = pltpu.get_tpu_info().vmem_capacity_bytes
        return min(int(cap * 3 // 4), 100 * 1024 * 1024)
    except Exception:
        return 48 * 1024 * 1024


def srupp_attention(x_lbd, w1, w2, w3, alpha, num_heads, *, batch_tile=1,
                    compute_dtype=jnp.bfloat16, out_dtype=jnp.bfloat16):
    """x_lbd: (L, B, in_features) in the PyTorch (seq, batch, feat) convention."""
    L, B, Din = x_lbd.shape
    P = w1.shape[0]                 # proj_features
    Dout = w3.shape[0]              # out_features
    assert P % num_heads == 0
    assert B % batch_tile == 0

    # Activation layout change; keep activations batch-major upstream in
    # production so this transpose leaves the per-call hot path.
    x = jnp.transpose(x_lbd, (1, 0, 2))                           # (B, L, Din)

    # One-time weight transposes (constant across grid steps and calls):
    # in-kernel contractions are then plain `lhs @ rhs` with no in-kernel
    # weight transpose.
    w1t = w1.T.astype(compute_dtype)                              # (Din, P)
    w2t = w2.T.astype(compute_dtype)                              # (P, 2P)
    w3t = w3.T.astype(compute_dtype)                              # (P, Dout)
    alpha_arr = jnp.asarray(alpha, jnp.float32).reshape(1)

    kernel = functools.partial(srupp_attention_kernel, num_heads=num_heads,
                               compute_dtype=compute_dtype)

    out = pl.pallas_call(
        kernel,
        out_shape=jax.ShapeDtypeStruct((B, L, Dout), out_dtype),
        grid=(B // batch_tile,),
        in_specs=[
            pl.BlockSpec(memory_space=pltpu.MemorySpace.SMEM),        # alpha
            pl.BlockSpec((batch_tile, L, Din), lambda b: (b, 0, 0)),  # x tile
            # Constant weights: single-buffered (index_map never changes, so
            # double-buffering would only waste VMEM -- critical on v7x).
            pl.BlockSpec((Din, P), lambda b: (0, 0),
                         pipeline_mode=pl.Buffered(1)),               # W1^T
            pl.BlockSpec((P, 2 * P), lambda b: (0, 0),
                         pipeline_mode=pl.Buffered(1)),               # W2^T
            pl.BlockSpec((P, Dout), lambda b: (0, 0),
                         pipeline_mode=pl.Buffered(1)),               # W3^T
        ],
        out_specs=pl.BlockSpec((batch_tile, L, Dout), lambda b: (b, 0, 0)),
        compiler_params=pltpu.CompilerParams(
            dimension_semantics=("parallel",),
            vmem_limit_bytes=_vmem_limit_bytes()),
    )(alpha_arr, x, w1t, w2t, w3t)

    return jnp.transpose(out, (1, 0, 2))                          # (L, B, Dout)


def srupp_attention_reference(x, w1, w2, w3, alpha, num_heads):
    """Pure-JAX f32 mirror of the PyTorch forward (memory/masks None, eval)."""
    L, B, Din = x.shape
    P = w1.shape[0]
    hd = P // num_heads
    z = x @ w1.T                                   # (L, B, P)
    kv = z @ w2.T
    k, v = kv[..., :P], kv[..., P:]
    q = jnp.transpose(z.reshape(L, B * num_heads, hd), (1, 0, 2)) * (hd ** -0.5)
    kk = jnp.transpose(k.reshape(L, B * num_heads, hd), (1, 0, 2))
    vv = jnp.transpose(v.reshape(L, B * num_heads, hd), (1, 0, 2))
    w = jax.nn.softmax(jnp.einsum('bld,bsd->bls', q, kk), axis=-1)
    o = jnp.einsum('bls,bsd->bld', w, vv)
    o = jnp.transpose(o, (1, 0, 2)).reshape(L, B, P)
    o = o * alpha + z
    return o @ w3.T


if __name__ == "__main__":
    # Small, lane-dense shapes: seq=8, batch=4 (2 per grid step), Din=128,
    # proj=256 with 2 heads -> head_dim=128 (lane-tile aligned), Dout=128.
    L, B = 8, 4
    in_features, proj_features, out_features = 128, 256, 128
    num_heads = 2
    rezero_init_alpha = 0.5   # nonzero so the attention path matters

    key = jax.random.PRNGKey(0)
    k1, k2, k3, k4 = jax.random.split(key, 4)

    def xavier_uniform(k, shape):
        fan_out, fan_in = shape
        a = (6.0 / (fan_in + fan_out)) ** 0.5
        return jax.random.uniform(k, shape, jnp.float32, -a, a)

    # nn.Linear weights are (out_features, in_features), bias=False
    w1 = xavier_uniform(k1, (proj_features, in_features))
    w2 = xavier_uniform(k2, (2 * proj_features, proj_features))
    w3 = xavier_uniform(k3, (out_features, proj_features))
    x = jax.random.normal(k4, (L, B, in_features), jnp.float32)

    out = srupp_attention(x, w1, w2, w3, rezero_init_alpha, num_heads,
                          batch_tile=2)
    out = jax.block_until_ready(out)

    ref = srupp_attention_reference(x, w1, w2, w3, rezero_init_alpha, num_heads)
    assert out.shape == (L, B, out_features)
    out_f32 = out.astype(jnp.float32)
    max_err = float(jnp.max(jnp.abs(out_f32 - ref)))
    # bf16 MXU operands + bf16 output + approx reciprocal -> bf16-level tol.
    assert bool(jnp.allclose(out_f32, ref, atol=5e-2, rtol=5e-2)), \
        f"max abs error {max_err}"
    print("KERNEL_OK")
</pallas_src>

<mosaic_0001>
module attributes {stable_mosaic.version = 11 : i64} {
  func.func @srupp_attention_kernel(%arg0: i32, %arg1: memref<1xf32, #tpu.memory_space<smem>>, %arg2: memref<2x8x128xf32, #tpu.memory_space<vmem>>, %arg3: memref<128x256xbf16, #tpu.memory_space<vmem>>, %arg4: memref<256x512xbf16, #tpu.memory_space<vmem>>, %arg5: memref<256x128xbf16, #tpu.memory_space<vmem>>, %arg6: memref<2x8x128xbf16, #tpu.memory_space<vmem>>) attributes {dimension_semantics = [#tpu.dimension_semantics<parallel>], iteration_bounds = array<i64: 2>, scalar_prefetch = 0 : i64, scratch_operands = 0 : i64, tpu.core_type = #tpu.core_type<tc>, window_params = [{transform_indices = @transform_0, window_bounds = array<i64: 1>}, {transform_indices = @transform_1, window_bounds = array<i64: 2, 8, 128>}, {pipeline_mode = #tpu.pipeline_mode<synchronous>, transform_indices = @transform_2, window_bounds = array<i64: 128, 256>}, {pipeline_mode = #tpu.pipeline_mode<synchronous>, transform_indices = @transform_3, window_bounds = array<i64: 256, 512>}, {pipeline_mode = #tpu.pipeline_mode<synchronous>, transform_indices = @transform_4, window_bounds = array<i64: 256, 128>}, {transform_indices = @transform_5, window_bounds = array<i64: 2, 8, 128>}]} {
    %c0 = arith.constant 0 : index
    %0 = memref.load %arg1[%c0] : memref<1xf32, #tpu.memory_space<smem>>
    %c0_0 = arith.constant 0 : index
    %c0_1 = arith.constant 0 : index
    %c0_2 = arith.constant 0 : index
    %1 = vector.load %arg2[%c0_0, %c0_1, %c0_2] : memref<2x8x128xf32, #tpu.memory_space<vmem>>, vector<2x8x128xf32>
    %2 = arith.truncf %1 : vector<2x8x128xf32> to vector<2x8x128xbf16>
    %3 = vector.shape_cast %2 : vector<2x8x128xbf16> to vector<16x128xbf16>
    %c0_3 = arith.constant 0 : index
    %c0_4 = arith.constant 0 : index
    %4 = vector.load %arg3[%c0_3, %c0_4] : memref<128x256xbf16, #tpu.memory_space<vmem>>, vector<128x256xbf16>
    %c0_5 = arith.constant 0 : index
    %c0_6 = arith.constant 0 : index
    %5 = vector.load %arg4[%c0_5, %c0_6] : memref<256x512xbf16, #tpu.memory_space<vmem>>, vector<256x512xbf16>
    %c0_7 = arith.constant 0 : index
    %c0_8 = arith.constant 0 : index
    %6 = vector.load %arg5[%c0_7, %c0_8] : memref<256x128xbf16, #tpu.memory_space<vmem>>, vector<256x128xbf16>
    %cst = arith.constant dense<0.000000e+00> : vector<16x256xf32>
    %7 = tpu.matmul %3, %4, %cst {dimension_numbers = #tpu.dot_dimension_numbers<[1], [0], [0], [1], [0, 0, 1, 1], [], []>} : vector<16x128xbf16>, vector<128x256xbf16>, vector<16x256xf32> -> vector<16x256xf32>
    %8 = arith.truncf %7 : vector<16x256xf32> to vector<16x256xbf16>
    %cst_9 = arith.constant dense<0.000000e+00> : vector<16x512xf32>
    %9 = tpu.matmul %8, %5, %cst_9 {dimension_numbers = #tpu.dot_dimension_numbers<[1], [0], [0], [1], [0, 0, 1, 1], [], []>} : vector<16x256xbf16>, vector<256x512xbf16>, vector<16x512xf32> -> vector<16x512xf32>
    %10 = vector.extract_strided_slice %7 {offsets = [0, 0], sizes = [8, 128], strides = [1, 1]} : vector<16x256xf32> to vector<8x128xf32>
    %11 = vector.extract_strided_slice %7 {offsets = [0, 128], sizes = [8, 128], strides = [1, 1]} : vector<16x256xf32> to vector<8x128xf32>
    %12 = vector.extract_strided_slice %7 {offsets = [8, 0], sizes = [8, 128], strides = [1, 1]} : vector<16x256xf32> to vector<8x128xf32>
    %13 = vector.extract_strided_slice %7 {offsets = [8, 128], sizes = [8, 128], strides = [1, 1]} : vector<16x256xf32> to vector<8x128xf32>
    %14 = vector.shape_cast %10 : vector<8x128xf32> to vector<1x8x128xf32>
    %15 = vector.shape_cast %11 : vector<8x128xf32> to vector<1x8x128xf32>
    %16 = vector.shape_cast %12 : vector<8x128xf32> to vector<1x8x128xf32>
    %17 = vector.shape_cast %13 : vector<8x128xf32> to vector<1x8x128xf32>
    %18 = tpu.concatenate %14, %15, %16, %17 in 0 : vector<1x8x128xf32>, vector<1x8x128xf32>, vector<1x8x128xf32>, vector<1x8x128xf32> -> vector<4x8x128xf32>
    %cst_10 = arith.constant 0.0883883461 : f32
    %19 = vector.broadcast %cst_10 : f32 to vector<4x8x128xf32>
    %20 = arith.mulf %18, %19 : vector<4x8x128xf32>
    %21 = arith.truncf %20 : vector<4x8x128xf32> to vector<4x8x128xbf16>
    %22 = vector.extract_strided_slice %9 {offsets = [0, 0], sizes = [8, 128], strides = [1, 1]} : vector<16x512xf32> to vector<8x128xf32>
    %23 = vector.extract_strided_slice %9 {offsets = [0, 128], sizes = [8, 128], strides = [1, 1]} : vector<16x512xf32> to vector<8x128xf32>
    %24 = vector.extract_strided_slice %9 {offsets = [8, 0], sizes = [8, 128], strides = [1, 1]} : vector<16x512xf32> to vector<8x128xf32>
    %25 = vector.extract_strided_slice %9 {offsets = [8, 128], sizes = [8, 128], strides = [1, 1]} : vector<16x512xf32> to vector<8x128xf32>
    %26 = vector.shape_cast %22 : vector<8x128xf32> to vector<1x8x128xf32>
    %27 = vector.shape_cast %23 : vector<8x128xf32> to vector<1x8x128xf32>
    %28 = vector.shape_cast %24 : vector<8x128xf32> to vector<1x8x128xf32>
    %29 = vector.shape_cast %25 : vector<8x128xf32> to vector<1x8x128xf32>
    %30 = tpu.concatenate %26, %27, %28, %29 in 0 : vector<1x8x128xf32>, vector<1x8x128xf32>, vector<1x8x128xf32>, vector<1x8x128xf32> -> vector<4x8x128xf32>
    %31 = arith.truncf %30 : vector<4x8x128xf32> to vector<4x8x128xbf16>
    %32 = vector.extract_strided_slice %9 {offsets = [0, 256], sizes = [8, 128], strides = [1, 1]} : vector<16x512xf32> to vector<8x128xf32>
    %33 = vector.extract_strided_slice %9 {offsets = [0, 384], sizes = [8, 128], strides = [1, 1]} : vector<16x512xf32> to vector<8x128xf32>
    %34 = vector.extract_strided_slice %9 {offsets = [8, 256], sizes = [8, 128], strides = [1, 1]} : vector<16x512xf32> to vector<8x128xf32>
    %35 = vector.extract_strided_slice %9 {offsets = [8, 384], sizes = [8, 128], strides = [1, 1]} : vector<16x512xf32> to vector<8x128xf32>
    %36 = vector.shape_cast %32 : vector<8x128xf32> to vector<1x8x128xf32>
    %37 = vector.shape_cast %33 : vector<8x128xf32> to vector<1x8x128xf32>
    %38 = vector.shape_cast %34 : vector<8x128xf32> to vector<1x8x128xf32>
    %39 = vector.shape_cast %35 : vector<8x128xf32> to vector<1x8x128xf32>
    %40 = tpu.concatenate %36, %37, %38, %39 in 0 : vector<1x8x128xf32>, vector<1x8x128xf32>, vector<1x8x128xf32>, vector<1x8x128xf32> -> vector<4x8x128xf32>
    %41 = arith.truncf %40 : vector<4x8x128xf32> to vector<4x8x128xbf16>
    "tpu.trace_start"() <{level = 10 : i32, message = "bld,bsd->bls"}> : () -> ()
    %cst_11 = arith.constant dense<0.000000e+00> : vector<4x8x8xf32>
    %42 = tpu.matmul %21, %31, %cst_11 {dimension_numbers = #tpu.dot_dimension_numbers<[2], [2], [1], [1], [0, 0, 0, 1, 1, 1], [0], [0]>} : vector<4x8x128xbf16>, vector<4x8x128xbf16>, vector<4x8x8xf32> -> vector<4x8x8xf32>
    "tpu.trace_stop"() : () -> ()
    %cst_12 = arith.constant dense<0xFF800000> : vector<4x8xf32>
    %43 = vector.multi_reduction <maximumf>, %42, %cst_12 [2] : vector<4x8x8xf32> to vector<4x8xf32>
    %44 = vector.shape_cast %43 : vector<4x8xf32> to vector<4x8x1xf32>
    %45 = vector.broadcast %44 : vector<4x8x1xf32> to vector<4x8x8xf32>
    %46 = arith.subf %42, %45 : vector<4x8x8xf32>
    %47 = math.exp %46 : vector<4x8x8xf32>
    %cst_13 = arith.constant dense<0.000000e+00> : vector<4x8xf32>
    %48 = vector.multi_reduction <add>, %47, %cst_13 [2] : vector<4x8x8xf32> to vector<4x8xf32>
    %49 = vector.shape_cast %48 : vector<4x8xf32> to vector<4x8x1xf32>
    %50 = tpu.reciprocal %49 {approx = true} : vector<4x8x1xf32> -> vector<4x8x1xf32>
    %51 = arith.truncf %47 : vector<4x8x8xf32> to vector<4x8x8xbf16>
    "tpu.trace_start"() <{level = 10 : i32, message = "bls,bsd->bld"}> : () -> ()
    %cst_14 = arith.constant dense<0.000000e+00> : vector<4x8x128xf32>
    %52 = tpu.matmul %51, %41, %cst_14 {dimension_numbers = #tpu.dot_dimension_numbers<[2], [1], [1], [2], [0, 0, 0, 1, 1, 2], [0], [0]>} : vector<4x8x8xbf16>, vector<4x8x128xbf16>, vector<4x8x128xf32> -> vector<4x8x128xf32>
    "tpu.trace_stop"() : () -> ()
    %53 = vector.broadcast %0 : f32 to vector<4x8x1xf32>
    %54 = arith.mulf %53, %50 : vector<4x8x1xf32>
    %55 = vector.broadcast %54 : vector<4x8x1xf32> to vector<4x8x128xf32>
    %56 = arith.mulf %52, %55 : vector<4x8x128xf32>
    %57 = vector.extract_strided_slice %56 {offsets = [0, 0, 0], sizes = [1, 8, 128], strides = [1, 1, 1]} : vector<4x8x128xf32> to vector<1x8x128xf32>
    %58 = vector.shape_cast %57 : vector<1x8x128xf32> to vector<8x128xf32>
    %59 = vector.extract_strided_slice %56 {offsets = [1, 0, 0], sizes = [1, 8, 128], strides = [1, 1, 1]} : vector<4x8x128xf32> to vector<1x8x128xf32>
    %60 = vector.shape_cast %59 : vector<1x8x128xf32> to vector<8x128xf32>
    %61 = tpu.concatenate %58, %60 in 1 : vector<8x128xf32>, vector<8x128xf32> -> vector<8x256xf32>
    %62 = vector.extract_strided_slice %56 {offsets = [2, 0, 0], sizes = [1, 8, 128], strides = [1, 1, 1]} : vector<4x8x128xf32> to vector<1x8x128xf32>
    %63 = vector.shape_cast %62 : vector<1x8x128xf32> to vector<8x128xf32>
    %64 = vector.extract_strided_slice %56 {offsets = [3, 0, 0], sizes = [1, 8, 128], strides = [1, 1, 1]} : vector<4x8x128xf32> to vector<1x8x128xf32>
    %65 = vector.shape_cast %64 : vector<1x8x128xf32> to vector<8x128xf32>
    %66 = tpu.concatenate %63, %65 in 1 : vector<8x128xf32>, vector<8x128xf32> -> vector<8x256xf32>
    %67 = tpu.concatenate %61, %66 in 0 : vector<8x256xf32>, vector<8x256xf32> -> vector<16x256xf32>
    %68 = arith.addf %67, %7 : vector<16x256xf32>
    %69 = arith.truncf %68 : vector<16x256xf32> to vector<16x256xbf16>
    %cst_15 = arith.constant dense<0.000000e+00> : vector<16x128xf32>
    %70 = tpu.matmul %69, %6, %cst_15 {dimension_numbers = #tpu.dot_dimension_numbers<[1], [0], [0], [1], [0, 0, 1, 1], [], []>} : vector<16x256xbf16>, vector<256x128xbf16>, vector<16x128xf32> -> vector<16x128xf32>
    %71 = vector.shape_cast %70 : vector<16x128xf32> to vector<2x8x128xf32>
    %72 = arith.truncf %71 : vector<2x8x128xf32> to vector<2x8x128xbf16>
    %c0_16 = arith.constant 0 : index
    %c0_17 = arith.constant 0 : index
    %c0_18 = arith.constant 0 : index
    %73 = vector.load %arg6[%c0_16, %c0_17, %c0_18] : memref<2x8x128xbf16, #tpu.memory_space<vmem>>, vector<2x8x128xbf16>
    tpu.vector_store %arg6[%c0_16, %c0_17, %c0_18], %72 {strides = array<i32>} : memref<2x8x128xbf16, #tpu.memory_space<vmem>>, vector<2x8x128xbf16>,
    return
  }
  func.func @transform_0(%arg0: i32) -> i32 {
    %c0_i32 = arith.constant 0 : i32
    %c0_i32_0 = arith.constant 0 : i32
    return %c0_i32 : i32
  }
  func.func @transform_1(%arg0: i32) -> (i32, i32, i32) {
    %c0_i32 = arith.constant 0 : i32
    %c0_i32_0 = arith.constant 0 : i32
    %c0_i32_1 = arith.constant 0 : i32
    return %arg0, %c0_i32, %c0_i32_0 : i32, i32, i32
  }
  func.func @transform_2(%arg0: i32) -> (i32, i32) {
    %c0_i32 = arith.constant 0 : i32
    %c0_i32_0 = arith.constant 0 : i32
    %c0_i32_1 = arith.constant 0 : i32
    return %c0_i32, %c0_i32_0 : i32, i32
  }
  func.func @transform_3(%arg0: i32) -> (i32, i32) {
    %c0_i32 = arith.constant 0 : i32
    %c0_i32_0 = arith.constant 0 : i32
    %c0_i32_1 = arith.constant 0 : i32
    return %c0_i32, %c0_i32_0 : i32, i32
  }
  func.func @transform_4(%arg0: i32) -> (i32, i32) {
    %c0_i32 = arith.constant 0 : i32
    %c0_i32_0 = arith.constant 0 : i32
    %c0_i32_1 = arith.constant 0 : i32
    return %c0_i32, %c0_i32_0 : i32, i32
  }
  func.func @transform_5(%arg0: i32) -> (i32, i32, i32) {
    %c0_i32 = arith.constant 0 : i32
    %c0_i32_0 = arith.constant 0 : i32
    %c0_i32_1 = arith.constant 0 : i32
    return %arg0, %c0_i32, %c0_i32_0 : i32, i32, i32
  }
}

</mosaic_0001>

<bundles_post_ra>
// kernel: tpu_custom_call.1
= control target key start
LH: loop header
LB: loop body
LE: loop exit
PB: predicated region body
PF: predicated region fallthrough
CT: control target
= control target key end

     0   :  { %s2653_s0 = inlined_call_operand.<no memory space> [shape: f32[1], index: 0, kind: input, shape index: {}]   ;;  %s2654_s1 = inlined_call_operand.hbm [shape: f32[4,8,128], index: 1, kind: input, shape index: {}]   ;;  %s2655_s2 = inlined_call_operand.hbm [shape: bf16[128,256], index: 2, kind: input, shape index: {}]   ;;  %s2656_s3 = inlined_call_operand.hbm [shape: bf16[256,512], index: 3, kind: input, shape index: {}]   ;;  %s2657_s4 = inlined_call_operand.hbm [shape: bf16[256,128], index: 4, kind: input, shape index: {}]   ;;  %s2658_s5 = inlined_call_operand.hbm [shape: bf16[4,8,128], index: 5, kind: output, shape index: {}]  }
   0x1   :  { %10 = sst [smem:[#allocation2]] %s2653_s0 }
   0x2   :  { %11 = vsyncpa [#allocation4], 0 }
   0x3   :  { %13 = vsyncpa [#allocation4 + $0x1], 0 }
   0x4   :  { %14 = vsyncpa [#allocation7], 0 }
   0x5   :  { %15 = vsyncpa [#allocation10], 0 }
   0x6   :  { %16 = vsyncpa [#allocation5], 0 }
   0x7   :  { %18 = vsyncpa [#allocation5 + $0x1], 0  ;;  %s2317_s20 = smov 0   ;;  %s2319_s21 = smov 0  }
   0x8   :  { %s2321_s22 = smov 0   ;;  %s2323_s23 = smov 0  }
   0x9 LB: > { %s2338_s0 = sadd.s32 4294967295, %s2266_s23   ;;  %s1623_s24 = sadd.s32 4294967294, %s2266_s23   ;;  %s2266_s23 = sphi %s2323_s23, %s2681_s23   ;;  %s2262_s22 = sphi %s2321_s22, %s2680_s22   ;;  %s2258_s21 = sphi %s2319_s21, %s2679_s21   ;;  %s2254_s20 = sphi %s2317_s20, %s2678_s20  }
   0xa   : > { %p65_p0 = scmp.ne.s32.totalorder %s2258_s21, %s2254_s20  ;;  %p2659_p1 = scmp.eq.s32.totalorder %s2338_s0, 0 }
   0xb   : > { %p158_p3 = scmp.eq.s32.totalorder %s1623_s24, 1  ;;  %p1624_p5 = scmp.ge.s32.totalorder %s2266_s23, 1 }
   0xc   : > { %p2347_p4 = por %p2659_p1, %p65_p0  ;;  %p165_p7 = scmp.lt.s32.totalorder %s2266_s23, 3 }
   0xd   : > { %p2352_p6 = por %p158_p3, %p65_p0  ;;  %s2268_s28 = smov [#allocation6]  }
   0xe   : > { %s2662_s25 = scalar_select %p2347_p4, 1, 0 }
   0xf   : > { %s2663_s26 = scalar_select %p2352_p6, 1, 0 }
  0x10   : > { %p2357_p8 = pnand %p1624_p5, %p165_p7  ;;  %s180_s29 = sshll.u32 %s2268_s28, 4  ;;  %s2361_s29 = int_to_ptr.vmem [resolvable:$true] %s180_s29 }
  0x11   : > { %s2269_s6 = smov [#allocation8]   ;;  %s2078_s10 = scalar_lea.hbm %s2655_s2, 2048 }
  0x12   : > { %s2664_s27 = scalar_select %p2357_p8, 1, 0 }
  0x13   : > { %p1854_p9 = pneg %p2357_p8  ;;  %s193_s7 = sshll.u32 %s2269_s6, 4  ;;  %s2372_s7 = int_to_ptr.vmem [resolvable:$true] %s193_s7 }
  0x14   : > { %p2079_p12 = scmp.ne.s32.totalorder %s2655_s2, %s2078_s10  ;;  %p2085_p5 = scmp.lt.u32.totalorder %s2078_s10, %s2655_s2 }
  0x15   : > { %p2368_p11 = pnand %p1854_p9, %p2659_p1 }
  0x17   : > { %p2382_p13 = pneg %p2368_p11 }
  0x19   : > { %p2081_p0 = pnand %p2382_p13, %p2079_p12 }
  0x1b   : > { %p2082_p3 = pneg %p2081_p0 }
  0x1d   : > { %p2087_p7 = pnand %p2085_p5, %p2082_p3 }
  0x1f   : > { %2090 = shalt.err (!%p2087_p7)
}
  0x20   : > { %s2091_s16 = scalar_lea.vmem %s2361_s29, 2048  ;;  %p2099_p2 = scmp.lt.s32.totalorder %s2361_s29, %s2361_s29 }
  0x21   : > { %p2092_p9 = scmp.ne.s32.totalorder %s2361_s29, %s2091_s16  ;;  %p2100_p6 = scmp.lt.s32.totalorder %s2091_s16, %s2091_s16 }
  0x23   : > { %p2094_p10 = pnand %p2092_p9, %p2382_p13  ;;  %p2101_p12 = por %p2100_p6, %p2099_p2 }
  0x25   : > { %p2095_p1 = pneg %p2094_p10 }
  0x27   : > { %p2102_p0 = pnand %p2101_p12, %p2095_p1 }
  0x29   : > { %2105 = shalt.err (!%p2102_p0)
}
  0x2a   : > { %s2270_s17 = smov 128   ;;  %s2271_s18 = smov 8  }
  0x2b   : > { %1857 = dma.hbm_to_vmem [thread:$0]  (!%p2368_p11), %s2655_s2, 2048, %s2361_s29, [#allocation7], %s2270_s17, %s2270_s17, %s2271_s18  }
  0x2c   : > { %s2106_s8 = scalar_lea.hbm %s2656_s3, 8192 }
  0x2d   : > { %p2107_p1 = scmp.ne.s32.totalorder %s2656_s3, %s2106_s8  ;;  %p2113_p10 = scmp.lt.u32.totalorder %s2106_s8, %s2656_s3 }
  0x2f   : > { %p2109_p2 = pnand %p2107_p1, %p2382_p13 }
  0x31   : > { %p2110_p6 = pneg %p2109_p2 }
  0x33   : > { %p2115_p3 = pnand %p2113_p10, %p2110_p6 }
  0x35   : > { %2118 = shalt.err (!%p2115_p3)
}
  0x36   : > { %s2119_s29 = scalar_lea.vmem %s2372_s7, 8192  ;;  %p2127_p12 = scmp.lt.s32.totalorder %s2372_s7, %s2372_s7 }
  0x37   : > { %p2120_p5 = scmp.ne.s32.totalorder %s2372_s7, %s2119_s29  ;;  %p2128_p0 = scmp.lt.s32.totalorder %s2119_s29, %s2119_s29 }
  0x39   : > { %p2122_p7 = pnand %p2120_p5, %p2382_p13  ;;  %p2129_p1 = por %p2128_p0, %p2127_p12 }
  0x3b   : > { %p2123_p9 = pneg %p2122_p7 }
  0x3d   : > { %p2130_p2 = pnand %p2129_p1, %p2123_p9 }
  0x3f   : > { %2133 = shalt.err (!%p2130_p2)
}
  0x40   : > { %s2272_s14 = smov 256   ;;  %s2273_s15 = smov 16  }
  0x41   : > { %1860 = dma.hbm_to_vmem [thread:$0]  (!%p2368_p11), %s2656_s3, 8192, %s2372_s7, [#allocation7], %s2272_s14, %s2272_s14, %s2273_s15  }
  0x42   : > { %s2274_s24 = smov [#allocation9]   ;;  %s2134_s9 = scalar_lea.hbm %s2657_s4, 2048 }
  0x43   : > { %s206_s28 = sshll.u32 %s2274_s24, 4  ;;  %p2135_p6 = scmp.ne.s32.totalorder %s2657_s4, %s2134_s9  ;;  %s207_s28 = int_to_ptr.vmem [resolvable:$true] %s206_s28 }
  0x44   : > { %p2141_p5 = scmp.lt.u32.totalorder %s2134_s9, %s2657_s4 }
  0x45   : > { %p2137_p10 = pnand %p2135_p6, %p2382_p13 }
  0x47   : > { %p2138_p3 = pneg %p2137_p10 }
  0x49   : > { %p2143_p7 = pnand %p2141_p5, %p2138_p3 }
  0x4b   : > { %2146 = shalt.err (!%p2143_p7)
}
  0x4c   : > { %s2147_s7 = scalar_lea.vmem %s207_s28, 2048  ;;  %p2155_p1 = scmp.lt.s32.totalorder %s207_s28, %s207_s28 }
  0x4d   : > { %p2148_p9 = scmp.ne.s32.totalorder %s207_s28, %s2147_s7  ;;  %p2156_p2 = scmp.lt.s32.totalorder %s2147_s7, %s2147_s7 }
  0x4f   : > { %p2150_p12 = pnand %p2148_p9, %p2382_p13  ;;  %p2157_p4 = por %p2156_p2, %p2155_p1 }
  0x51   : > { %p2151_p0 = pneg %p2150_p12 }
  0x53   : > { %p2158_p8 = pnand %p2157_p4, %p2151_p0 }
  0x55   : > { %2161 = shalt.err (!%p2158_p8)
}
  0x56   : > { %s2275_s14 = smov 64   ;;  %s2276_s13 = smov 4  }
  0x57   : > { %1863 = dma.hbm_to_vmem [thread:$0]  (!%p2368_p11), %s2657_s4, 2048, %s207_s28, [#allocation10], %s2275_s14, %s2275_s14, %s2276_s13  }
  0x58   : > { %s2448_s19 = sadd.s32 1, %s2266_s23   ;;  %s52_s6 = sadd.s32 1, %s2262_s22 }
  0x59   : > { %s49_s24 = ssub.s32 %s2266_s23, %s2448_s19  ;;  %p59_p8 = scmp.ne.s32.totalorder %s2262_s22, %s2258_s21 }
  0x5a   : > { %p50_p4 = scmp.eq.s32.totalorder %s49_s24, 0  ;;  %p60_p13 = scmp.eq.s32.totalorder %s2266_s23, 0 }
  0x5b   : > { %p1875_p6 = scmp.lt.s32.totalorder %s2266_s23, 2  ;;  %p2667_p3 = scmp.eq.s32.totalorder %s2338_s0, 1 }
  0x5c   : > { %s2458_s8 = scalar_select %p50_p4, %s2262_s22, %s52_s6  }
  0x5d   : > { %p61_p10 = por %p60_p13, %p59_p8  ;;  %p2462_p5 = por %p2667_p3, %p59_p8 }
  0x5e   : > { %s220_s30 = sand.u32 1, %s2262_s22   ;;  %s1744_s10 = sshll.u32 %s2266_s23, 8 }
  0x5f   : > { %s1629_s28 = sshll.u32 %s220_s30, 4  ;;  %s2471_s29 = scalar_lea.hbm %s2654_s1, %s1744_s10 }
  0x60   : > { %s224_s7 = scalar_lea.vmem [#allocation3], %s1629_s28  ;;  %p2473_p11 = pnand %p1875_p6, %p61_p10 }
  0x61   : > { %s231_s14 = sshll.u32 %s224_s7, 4  ;;  %s2479_s15 = scalar_lea.sflag [#allocation4], %s220_s30  ;;  %s2477_s14 = int_to_ptr.vmem [resolvable:$true] %s231_s14 }
  0x62   : > { %s2162_s16 = scalar_lea.hbm %s2471_s29, 256  ;;  %p2164_p9 = pneg %p2473_p11 }
  0x63   : > { %p2163_p7 = scmp.ne.s32.totalorder %s2471_s29, %s2162_s16  ;;  %s2167_s10 = scalar_lea.hbm %s2654_s1, 512 }
  0x64   : > { %p2168_p1 = scmp.lt.u32.totalorder %s2471_s29, %s2654_s1  ;;  %p2169_p2 = scmp.lt.u32.totalorder %s2167_s10, %s2162_s16 }
  0x65   : > { %p2165_p12 = pnand %p2164_p9, %p2163_p7  ;;  %p2171_p8 = scmp.lt.u32.totalorder %s2162_s16, %s2471_s29 }
  0x66   : > { %p2170_p4 = por %p2169_p2, %p2168_p1 }
  0x67   : > { %p2166_p0 = pneg %p2165_p12 }
  0x68   : > { %p2172_p13 = por %p2171_p8, %p2170_p4 }
  0x6a   : > { %p2173_p6 = pnand %p2172_p13, %p2166_p0 }
  0x6c   : > { %2176 = shalt.err (!%p2173_p6)
}
  0x6d   : > { %s2177_s30 = scalar_lea.vmem %s2477_s14, 256  ;;  %s2277_s12 = smov [#allocation3]  }
  0x6e   : > { %p2178_p10 = scmp.ne.s32.totalorder %s2477_s14, %s2177_s30  ;;  %s2182_s7 = sshll.u32 %s2277_s12, 4  ;;  %s2183_s7 = int_to_ptr.vmem [resolvable:$false] %s2182_s7 }
  0x6f   : > { %s2184_s24 = scalar_lea.vmem %s2183_s7, 512  ;;  %p2185_p12 = scmp.lt.s32.totalorder %s2477_s14, %s2183_s7 }
  0x70   : > { %p2180_p3 = pnand %p2178_p10, %p2164_p9  ;;  %p2186_p1 = scmp.lt.s32.totalorder %s2184_s24, %s2177_s30 }
  0x72   : > { %p2181_p7 = pneg %p2180_p3  ;;  %p2187_p2 = por %p2186_p1, %p2185_p12 }
  0x74   : > { %p2188_p4 = pnand %p2187_p2, %p2181_p7 }
  0x76   : > { %2191 = shalt.err (!%p2188_p4)
}
  0x77   : > { %1867 = dma.hbm_to_vmem [thread:$0]  (!%p2473_p11), %s2471_s29, 256, %s2477_s14, %s2479_s15, %s2270_s17, %s2270_s17, %s2271_s18  }
  0x78   : > { %p2670_p9 = scmp.ne.s32.totalorder %s2664_s27, 0 }
  0x79   : > { %s2513_s16 = sand.u32 (!%p2670_p9), 1, %s2258_s21   ;;  %p2671_p0 = scmp.ne.s32.totalorder (!%p2670_p9), %s2662_s25, 0 }
  0x7a   : > { %243 = sbr.rel (%p2670_p9) target bundleno = 1458 (0x5b2), region = 40  ;;  %s1633_s6 = sshll.u32 (!%p2670_p9), %s2513_s16, 4 }
  0x7b   : > { %s246_s10 = scalar_lea.sflag (!%p2670_p9), [#allocation4], %s2513_s16  ;;  %s2517_s28 = scalar_lea.vmem (!%p2670_p9), [#allocation3], %s1633_s6 }
  0x81   : > { %2237 = dma.done.wait (%p2671_p0), %s246_s10, 256  }
  0x82   : > { %2239 = vsyncadd (%p2671_p0), %s246_s10, 4294967040  ;;  %p2672_p11 = scmp.eq.s32.totalorder %s2338_s0, 0 }
  0x84   : > { %2241 = dma.done.wait (%p2672_p11), [#allocation7], 10240   ;;  %p2673_p8 = pmov %p2672_p11 }
  0x86   : > { %2243 = vsyncadd (%p2673_p8), [#allocation7], 4294957056  ;;  %p2674_p13 = pmov %p2673_p8 }
  0x87   : > { %p2675_p6 = pmov %p2673_p8 }
  0x88   : > { %2245 = dma.done.wait (%p2674_p13), [#allocation10], 2048  }
  0x89   : > { %2247 = vsyncadd (%p2675_p6), [#allocation10], 4294965248  ;;  %v2278_v0 = vmov 0   ;;  %v1926_v1 = vld [vmem:[#allocation6 + $0x4] ss:$8 sps:$4 sm:$0xff]   ;;  %vm2280_vm0 = vmmov 0  }
  0x8a   : > { %526 = vmatprep.mubr.bf16.mxu0 %v2278_v0  ;;  %v1928_v2 = vld [vmem:[#allocation6] ss:$8 sps:$4 sm:$0xff]   ;;  %494 = vmatprep.subr.bf16.mxu0 %v1926_v1  ;;  %v1929_v3 = vld [vmem:[#allocation6 + $0x14] ss:$8 sps:$4 sm:$0xff]   ;;  %v1931_v4 = vld [vmem:[#allocation6 + $0x10] ss:$8 sps:$4 sm:$0xff]  }
  0x8b   : > { %495 = vmatpush1.bf16.msra.mxu0 %v1928_v2  ;;  %v1932_v5 = vld [vmem:[#allocation6 + $0x24] ss:$8 sps:$4 sm:$0xff]   ;;  %v1934_v6 = vld [vmem:[#allocation6 + $0x20] ss:$8 sps:$4 sm:$0xff]   ;;  %v1935_v7 = vld [vmem:[#allocation6 + $0x34] ss:$8 sps:$4 sm:$0xff]  }
  0x8c   : > { %496 = vmatprep.subr.bf16.mxu0 %v1929_v3  ;;  %v1937_v8 = vld [vmem:[#allocation6 + $0x30] ss:$8 sps:$4 sm:$0xff]   ;;  %v1938_v9 = vld [vmem:[#allocation6 + $0x44] ss:$8 sps:$4 sm:$0xff]   ;;  %v1940_v13 = vld [vmem:[#allocation6 + $0x40] ss:$8 sps:$4 sm:$0xff]  }
  0x8d   : > { %v1950_v10 = vld [vmem:[#allocation8 + $0x4] ss:$16 sps:$4 sm:$0xff]   ;;  %v1955_v11 = vld [vmem:[#allocation8] ss:$16 sps:$4 sm:$0xff]   ;;  %v293_v27 = vld [vmem:[%s2517_s28 + $0x8] sm:$0xff]  ;;  %vm1169_vm1 = vcmask 1043456  }
  0x8e   : > { %859 = vmatprep.subr.bf16.mxu1 %v1950_v10  ;;  %v1956_v12 = vld [vmem:[#allocation8 + $0x24] ss:$16 sps:$4 sm:$0xff]   ;;  %v1961_v15 = vld [vmem:[#allocation8 + $0x20] ss:$16 sps:$4 sm:$0xff]   ;;  %v1954_v28 = vld [vmem:[#allocation8 + $0xc] ss:$16 sps:$4 sm:$0xff]  }
  0x8f   : > { %497 = vmatpush1.bf16.msra.mxu0 %v1931_v4  ;;  %860 = vmatpush1.bf16.msra.mxu1 %v1955_v11  ;;  %v1941_v14 = vld [vmem:[#allocation6 + $0x54] ss:$8 sps:$4 sm:$0xff]   ;;  %v1943_v17 = vld [vmem:[#allocation6 + $0x50] ss:$8 sps:$4 sm:$0xff]   ;;  %v1944_v18 = vld [vmem:[#allocation6 + $0x64] ss:$8 sps:$4 sm:$0xff]  }
  0x90   : > { %498 = vmatprep.subr.bf16.mxu0 %v1932_v5  ;;  %861 = vmatprep.subr.bf16.mxu1 %v1956_v12  ;;  %v1962_v16 = vld [vmem:[#allocation8 + $0x44] ss:$16 sps:$4 sm:$0xff]   ;;  %v1967_v19 = vld [vmem:[#allocation8 + $0x40] ss:$16 sps:$4 sm:$0xff]   ;;  %v1952_v32 = vld [vmem:[#allocation8 + $0x8] ss:$16 sps:$4 sm:$0xff]  }
  0x91   : > { %v1968_v20 = vld [vmem:[#allocation8 + $0x64] ss:$16 sps:$4 sm:$0xff]   ;;  %v1946_v21 = vld [vmem:[#allocation6 + $0x60] ss:$8 sps:$4 sm:$0xff]   ;;  %v1949_v25 = vld [vmem:[#allocation6 + $0x70] ss:$8 sps:$4 sm:$0xff]  }
  0x92   : > { %v1973_v22 = vld [vmem:[#allocation8 + $0x60] ss:$16 sps:$4 sm:$0xff]   ;;  %v1947_v23 = vld [vmem:[#allocation6 + $0x74] ss:$8 sps:$4 sm:$0xff]   ;;  %v1958_v36 = vld [vmem:[#allocation8 + $0x28] ss:$16 sps:$4 sm:$0xff]  }
  0x93   : > { %499 = vmatpush1.bf16.msra.mxu0 %v1934_v6  ;;  %862 = vmatpush1.bf16.msra.mxu1 %v1961_v15  ;;  %v1974_v24 = vld [vmem:[#allocation8 + $0x84] ss:$16 sps:$4 sm:$0xff]   ;;  %v1979_v29 = vld [vmem:[#allocation8 + $0x80] ss:$16 sps:$4 sm:$0xff]   ;;  %v1960_v34 = vld [vmem:[#allocation8 + $0x2c] ss:$16 sps:$4 sm:$0xff]  }
  0x94   : > { %500 = vmatprep.subr.bf16.mxu0 %v1935_v7  ;;  %863 = vmatprep.subr.bf16.mxu1 %v1962_v16  ;;  %v292_v26 = vld [vmem:[%s2517_s28] sm:$0xff]  ;;  %v1966_v37 = vld [vmem:[#allocation8 + $0x4c] ss:$16 sps:$4 sm:$0xff]   ;;  %v1964_v40 = vld [vmem:[#allocation8 + $0x48] ss:$16 sps:$4 sm:$0xff]   ;;  %vm1121_vm2 = vcmask 64512  }
  0x95   : > { %v1980_v30 = vld [vmem:[#allocation8 + $0xa4] ss:$16 sps:$4 sm:$0xff]   ;;  %v1745_v31 = vpack.c.bf16 %v293_v27, %v292_v26  ;;  %v1985_v33 = vld [vmem:[#allocation8 + $0xa0] ss:$16 sps:$4 sm:$0xff]   ;;  %v1972_v42 = vld [vmem:[#allocation8 + $0x6c] ss:$16 sps:$4 sm:$0xff]  }
  0x96   : > { %v1986_v35 = vld [vmem:[#allocation8 + $0xc4] ss:$16 sps:$4 sm:$0xff]   ;;  %v1991_v38 = vld [vmem:[#allocation8 + $0xc0] ss:$16 sps:$4 sm:$0xff]   ;;  %v1970_v44 = vld [vmem:[#allocation8 + $0x68] ss:$16 sps:$4 sm:$0xff]  }
  0x97   : > { %501 = vmatpush1.bf16.msra.mxu0 %v1937_v8  ;;  %864 = vmatpush1.bf16.msra.mxu1 %v1967_v19  ;;  %v1992_v39 = vld [vmem:[#allocation8 + $0xe4] ss:$16 sps:$4 sm:$0xff]   ;;  %v1997_v41 = vld [vmem:[#allocation8 + $0xe0] ss:$16 sps:$4 sm:$0xff]   ;;  %v1978_v45 = vld [vmem:[#allocation8 + $0x8c] ss:$16 sps:$4 sm:$0xff]  }
  0x98   : > { %502 = vmatprep.subr.bf16.mxu0 %v1938_v9  ;;  %865 = vmatprep.subr.bf16.mxu1 %v1968_v20  ;;  %v1998_v43 = vld [vmem:[#allocation8 + $0x104] ss:$16 sps:$4 sm:$0xff]   ;;  %v2003_v46 = vld [vmem:[#allocation8 + $0x100] ss:$16 sps:$4 sm:$0xff]   ;;  %v1976_v48 = vld [vmem:[#allocation8 + $0x88] ss:$16 sps:$4 sm:$0xff]  }
  0x99   : > { %v2004_v47 = vld [vmem:[#allocation8 + $0x124] ss:$16 sps:$4 sm:$0xff]   ;;  %v2009_v49 = vld [vmem:[#allocation8 + $0x120] ss:$16 sps:$4 sm:$0xff]   ;;  %v1984_v50 = vld [vmem:[#allocation8 + $0xac] ss:$16 sps:$4 sm:$0xff]  }
  0x9a   : > { %v2010_v51 = vld [vmem:[#allocation8 + $0x144] ss:$16 sps:$4 sm:$0xff]   ;;  %v1982_v52 = vld [vmem:[#allocation8 + $0xa8] ss:$16 sps:$4 sm:$0xff]   ;;  %v1990_v53 = vld [vmem:[#allocation8 + $0xcc] ss:$16 sps:$4 sm:$0xff]  }
  0x9b   : > { %503 = vmatpush1.bf16.msra.mxu0 %v1940_v13  ;;  %866 = vmatpush1.bf16.msra.mxu1 %v1973_v22  ;;  %v2015_v54 = vld [vmem:[#allocation8 + $0x140] ss:$16 sps:$4 sm:$0xff]   ;;  %v2016_v55 = vld [vmem:[#allocation8 + $0x164] ss:$16 sps:$4 sm:$0xff]   ;;  %v1988_v56 = vld [vmem:[#allocation8 + $0xc8] ss:$16 sps:$4 sm:$0xff]  }
  0x9c   : > { %504 = vmatprep.subr.bf16.mxu0 %v1941_v14  ;;  %867 = vmatprep.subr.bf16.mxu1 %v1974_v24  ;;  %v2021_v57 = vld [vmem:[#allocation8 + $0x160] ss:$16 sps:$4 sm:$0xff]   ;;  %v1996_v58 = vld [vmem:[#allocation8 + $0xec] ss:$16 sps:$4 sm:$0xff]   ;;  %v2022_v59 = vld [vmem:[#allocation8 + $0x184] ss:$16 sps:$4 sm:$0xff]  }
  0x9d   : > { %v1994_v60 = vld [vmem:[#allocation8 + $0xe8] ss:$16 sps:$4 sm:$0xff]   ;;  %v2027_v61 = vld [vmem:[#allocation8 + $0x180] ss:$16 sps:$4 sm:$0xff]   ;;  %v2002_v62 = vld [vmem:[#allocation8 + $0x10c] ss:$16 sps:$4 sm:$0xff]  }
  0x9e   : > { %v2028_v63 = vld [vmem:[#allocation8 + $0x1a4] ss:$16 sps:$4 sm:$0xff]   ;;  %v2000_v0 = vld [vmem:[#allocation8 + $0x108] ss:$16 sps:$4 sm:$0xff]   ;;  %v2033_v1 = vld [vmem:[#allocation8 + $0x1a0] ss:$16 sps:$4 sm:$0xff]  }
  0x9f   : > { %505 = vmatpush1.bf16.msra.mxu0 %v1943_v17  ;;  %868 = vmatpush1.bf16.msra.mxu1 %v1979_v29  ;;  %v2008_v2 = vld [vmem:[#allocation8 + $0x12c] ss:$16 sps:$4 sm:$0xff]   ;;  %v2034_v3 = vld [vmem:[#allocation8 + $0x1c4] ss:$16 sps:$4 sm:$0xff]   ;;  %v2006_v4 = vld [vmem:[#allocation8 + $0x128] ss:$16 sps:$4 sm:$0xff]  }
  0xa0   : > { %506 = vmatprep.subr.bf16.mxu0 %v1944_v18  ;;  %869 = vmatprep.subr.bf16.mxu1 %v1980_v30  ;;  %v2014_v5 = vld [vmem:[#allocation8 + $0x14c] ss:$16 sps:$4 sm:$0xff]   ;;  %v2012_v6 = vld [vmem:[#allocation8 + $0x148] ss:$16 sps:$4 sm:$0xff]   ;;  %v2039_v15 = vld [vmem:[#allocation8 + $0x1c0] ss:$16 sps:$4 sm:$0xff]  }
  0xa1   : > { %v2020_v7 = vld [vmem:[#allocation8 + $0x16c] ss:$16 sps:$4 sm:$0xff]   ;;  %v2018_v8 = vld [vmem:[#allocation8 + $0x168] ss:$16 sps:$4 sm:$0xff]   ;;  %v2040_v16 = vld [vmem:[#allocation8 + $0x1e4] ss:$16 sps:$4 sm:$0xff]  }
  0xa2   : > { %v2026_v9 = vld [vmem:[#allocation8 + $0x18c] ss:$16 sps:$4 sm:$0xff]   ;;  %v2024_v10 = vld [vmem:[#allocation8 + $0x188] ss:$16 sps:$4 sm:$0xff]   ;;  %v2045_v19 = vld [vmem:[#allocation8 + $0x1e0] ss:$16 sps:$4 sm:$0xff]  }
  0xa3   : > { %507 = vmatpush1.bf16.msra.mxu0 %v1946_v21  ;;  %870 = vmatpush1.bf16.msra.mxu1 %v1985_v33  ;;  %v2032_v11 = vld [vmem:[#allocation8 + $0x1ac] ss:$16 sps:$4 sm:$0xff]   ;;  %v2030_v12 = vld [vmem:[#allocation8 + $0x1a8] ss:$16 sps:$4 sm:$0xff]   ;;  %v2279_v26 = vmov 0.0   ;;  %s291_s25 = sld [smem:[#allocation2]] }
  0xa4   : > { %508 = vmatprep.subr.bf16.mxu0 %v1947_v23  ;;  %871 = vmatprep.subr.bf16.mxu1 %v1986_v35  ;;  %v2038_v13 = vld [vmem:[#allocation8 + $0x1cc] ss:$16 sps:$4 sm:$0xff]   ;;  %v2036_v14 = vld [vmem:[#allocation8 + $0x1c8] ss:$16 sps:$4 sm:$0xff]   ;;  %s1637_s27 = sshll.u32 %s2513_s16, 3  ;;  %s1746_s29 = sshll.u32 %s2338_s0, 7 }
  0xa5   : > { %v2044_v17 = vld [vmem:[#allocation8 + $0x1ec] ss:$16 sps:$4 sm:$0xff]   ;;  %v2042_v18 = vld [vmem:[#allocation8 + $0x1e8] ss:$16 sps:$4 sm:$0xff]   ;;  %s287_s17 = scalar_lea.vmem [#allocation11], %s1637_s27  ;;  %s2609_s15 = scalar_lea.hbm %s2658_s5, %s1746_s29 }
  0xa6   : > { %s1521_s18 = sshll.u32 %s287_s17, 4  ;;  %s1508_s11 = scalar_lea.sflag [#allocation5], %s2513_s16  ;;  %s2604_s18 = int_to_ptr.vmem [resolvable:$true] %s1521_s18 }
  0xa7   : > { %509 = vmatpush1.bf16.msra.mxu0 %v1949_v25  ;;  %872 = vmatpush1.bf16.msra.mxu1 %v1991_v38  ;;  %s2192_s30 = scalar_lea.vmem %s2604_s18, 128  ;;  %s2281_s0 = smov [#allocation11]  }
  0xa8   : > { %902 = vmatprep.subr.bf16.mxu0 %v1954_v28  ;;  %873 = vmatprep.subr.bf16.mxu1 %v1992_v39  ;;  %p2193_p10 = scmp.ne.s32.totalorder %s2604_s18, %s2192_s30  ;;  %s2196_s12 = sshll.u32 %s2281_s0, 4  ;;  %s2197_s12 = int_to_ptr.vmem [resolvable:$false] %s2196_s12 }
  0xa9   : > { %s2198_s7 = scalar_lea.vmem %s2197_s12, 256  ;;  %p2199_p12 = scmp.lt.s32.totalorder %s2604_s18, %s2197_s12 }
  0xaa   : > { %527 = vmatmul.mubr.bf16.vlgmr.msra.gmra.mrb[0].mxu0 %v1745_v31  ;;  %p2194_p3 = pnand %p2193_p10, %p2462_p5  ;;  %p2200_p1 = scmp.lt.s32.totalorder %s2198_s7, %s2192_s30 }
  0xab   : > { %903 = vmatpush1.bf16.msra.mxu0 %v1952_v32  ;;  %874 = vmatpush1.bf16.msra.mxu1 %v1997_v41 }
  0xac   : > { %904 = vmatprep.subr.bf16.mxu0 %v1960_v34  ;;  %875 = vmatprep.subr.bf16.mxu1 %v1998_v43  ;;  %p2195_p7 = pneg %p2194_p3  ;;  %p2201_p2 = por %p2200_p1, %p2199_p12 }
  0xae   : > { %p2202_p4 = pnand %p2201_p2, %p2195_p7 }
  0xaf   : > { %905 = vmatpush1.bf16.msra.mxu0 %v1958_v36  ;;  %876 = vmatpush1.bf16.msra.mxu1 %v2003_v46 }
  0xb0   : > { %906 = vmatprep.subr.bf16.mxu0 %v1966_v37  ;;  %877 = vmatprep.subr.bf16.mxu1 %v2004_v47 }
  0xb3   : > { %907 = vmatpush1.bf16.msra.mxu0 %v1964_v40  ;;  %878 = vmatpush1.bf16.msra.mxu1 %v2009_v49 }
  0xb4   : > { %908 = vmatprep.subr.bf16.mxu0 %v1972_v42  ;;  %879 = vmatprep.subr.bf16.mxu1 %v2010_v51 }
  0xb7   : > { %909 = vmatpush1.bf16.msra.mxu0 %v1970_v44  ;;  %880 = vmatpush1.bf16.msra.mxu1 %v2015_v54 }
  0xb8   : > { %910 = vmatprep.subr.bf16.mxu0 %v1978_v45  ;;  %881 = vmatprep.subr.bf16.mxu1 %v2016_v55 }
  0xbb   : > { %911 = vmatpush1.bf16.msra.mxu0 %v1976_v48  ;;  %882 = vmatpush1.bf16.msra.mxu1 %v2021_v57 }
  0xbc   : > { %912 = vmatprep.subr.bf16.mxu0 %v1984_v50  ;;  %883 = vmatprep.subr.bf16.mxu1 %v2022_v59 }
  0xbf   : > { %913 = vmatpush1.bf16.msra.mxu0 %v1982_v52  ;;  %884 = vmatpush1.bf16.msra.mxu1 %v2027_v61 }
  0xc0   : > { %914 = vmatprep.subr.bf16.mxu0 %v1990_v53  ;;  %885 = vmatprep.subr.bf16.mxu1 %v2028_v63 }
  0xc3   : > { %915 = vmatpush1.bf16.msra.mxu0 %v1988_v56  ;;  %886 = vmatpush1.bf16.msra.mxu1 %v2033_v1 }
  0xc4   : > { %916 = vmatprep.subr.bf16.mxu0 %v1996_v58  ;;  %887 = vmatprep.subr.bf16.mxu1 %v2034_v3 }
  0xc7   : > { %917 = vmatpush1.bf16.msra.mxu0 %v1994_v60  ;;  %888 = vmatpush1.bf16.msra.mxu1 %v2039_v15 }
  0xc8   : > { %918 = vmatprep.subr.bf16.mxu0 %v2002_v62  ;;  %889 = vmatprep.subr.bf16.mxu1 %v2040_v16 }
  0xcb   : > { %919 = vmatpush1.bf16.msra.mxu0 %v2000_v0  ;;  %890 = vmatpush1.bf16.msra.mxu1 %v2045_v19 }
  0xcc   : > { %920 = vmatprep.subr.bf16.mxu0 %v2008_v2  ;;  %1790 = vmatprep.subr.bf16.mxu1 %v2279_v26 }
  0xcf   : > { %921 = vmatpush1.bf16.msra.mxu0 %v2006_v4 }
  0xd0   : > { %922 = vmatprep.subr.bf16.mxu0 %v2014_v5 }
  0xd3   : > { %923 = vmatpush1.bf16.msra.mxu0 %v2012_v6 }
  0xd4   : > { %924 = vmatprep.subr.bf16.mxu0 %v2020_v7 }
  0xd7   : > { %925 = vmatpush1.bf16.msra.mxu0 %v2018_v8 }
  0xd8   : > { %926 = vmatprep.subr.bf16.mxu0 %v2026_v9 }
  0xdb   : > { %927 = vmatpush1.bf16.msra.mxu0 %v2024_v10 }
  0xdc   : > { %928 = vmatprep.subr.bf16.mxu0 %v2032_v11 }
  0xdf   : > { %929 = vmatpush1.bf16.msra.mxu0 %v2030_v12 }
  0xe0   : > { %930 = vmatprep.subr.bf16.mxu0 %v2038_v13 }
  0xe3   : > { %931 = vmatpush1.bf16.msra.mxu0 %v2036_v14 }
  0xe4   : > { %932 = vmatprep.subr.bf16.mxu0 %v2044_v17 }
  0xe7   : > { %933 = vmatpush1.bf16.msra.mxu0 %v2042_v18 }
 0x17d   : > { %v2533_v20 = vpop.f32.mrb[0].mxu0 }
 0x17e   : > { %v2535_v21 = vpop.f32.mrb[1].mxu0  ;;  %v945_v38 = vmul.f32 0.088388346, %v2533_v20 }
 0x17f   : > { %v2537_v22 = vpop.f32.mrb[2].mxu0  ;;  %v946_v45 = vmul.f32 0.088388346, %v2535_v21 }
 0x180   : > { %v537_v23 = vpack.c.bf16 %v2537_v22, %v2533_v20  ;;  %v2541_v24 = vpop.f32.mrb[3].mxu0  ;;  %v949_v43 = vpack.c.bf16 %v945_v38, %v945_v38  ;;  %v947_v48 = vmul.f32 0.088388346, %v2537_v22 }
 0x181   : > { %v538_v25 = vpack.c.bf16 %v2541_v24, %v2535_v21  ;;  %v950_v46 = vpack.c.bf16 %v946_v45, %v946_v45  ;;  %v948_v51 = vmul.f32 0.088388346, %v2541_v24  ;;  %v2052_v45 = vld [vmem:[#allocation9 + $0x58] sm:$0xff]  }
 0x182   : > { %v951_v49 = vpack.c.bf16 %v947_v48, %v947_v48  ;;  %v2055_v48 = vld [vmem:[#allocation9 + $0x20] sm:$0xff]  }
 0x183   : > { %891 = vmatprep.mubr.bf16.mxu1 %v538_v25  ;;  %934 = vmatprep.mubr.bf16.mxu0 %v538_v25  ;;  %v952_v53 = vpack.c.bf16 %v948_v51, %v948_v51  ;;  %v2058_v51 = vld [vmem:[#allocation9 + $0x70] sm:$0xff]  }
 0x184   : > { %892 = vmatmul.mubr.bf16.vlgmr.msra.gmra.mrb[0].mxu1 %v537_v23  ;;  %935 = vmatmul.mubr.bf16.vlgmr.msra.gmra.mrb[4].mxu0 %v537_v23 }
 0x185   : > { %1792 = vmatprep.mubr.msk.bf16.mxu1 %vm2280_vm0, %v2279_v26 }
 0x257   : > { %v893_v27 = vpop.f32.mrb[0].mxu1  ;;  %v936_v28 = vpop.f32.mrb[4].mxu0 }
 0x258   : > { %v953_v29 = vpack.c.bf16 %v893_v27, %v893_v27  ;;  %v895_v30 = vpop.f32.mrb[1].mxu1  ;;  %v938_v31 = vpop.f32.mrb[5].mxu0  ;;  %v957_v52 = vpack.c.bf16 %v936_v28, %v936_v28 }
 0x259   : > { %v958_v32 = vpack.c.bf16 %v938_v31, %v938_v31  ;;  %v897_v33 = vpop.f32.mrb[2].mxu1  ;;  %v940_v34 = vpop.f32.mrb[6].mxu0  ;;  %v954_v44 = vpack.c.bf16 %v895_v30, %v895_v30 }
 0x25a   : > { %v959_v35 = vpack.c.bf16 %v940_v34, %v940_v34  ;;  %v899_v36 = vpop.f32.mrb[3].mxu1  ;;  %v942_v37 = vpop.f32.mrb[7].mxu0  ;;  %1791 = vmatpush3.bf16.xpose.msra.mxu1 %v953_v29  ;;  %v955_v47 = vpack.c.bf16 %v897_v33, %v897_v33  ;;  %v1171_v54 = vsel %vm1169_vm1, %v957_v52, 0  ;;  %v2059_v52 = vld [vmem:[#allocation9 + $0x30] sm:$0xff]  }
 0x25b   : > { %v2550_v39 = vsel %vm1169_vm1, %v958_v32, 0  ;;  %v960_v40 = vpack.c.bf16 %v942_v37, %v942_v37  ;;  %1796 = vmatprep.subr.bf16.mxu1 %v2279_v26  ;;  %v956_v50 = vpack.c.bf16 %v899_v36, %v899_v36 }
 0x25c   : > { %v2554_v41 = vsel %vm1169_vm1, %v959_v35, 0 }
 0x25d   : > { %v2557_v42 = vsel %vm1169_vm1, %v960_v40, 0  ;;  %v2046_v40 = vld [vmem:[#allocation9 + $0x40] sm:$0xff]  }
 0x25e   : > { %1768 = vmatprep.subr.bf16.mxu0 %v2046_v40 }
 0x261   : > { %1793 = vmatmul.mubr.bf16.vlgmr.msra.gmra.mrb[4].mxu1 %v949_v43  ;;  %v2048_v43 = vld [vmem:[#allocation9 + $0x48] sm:$0xff]  }
 0x262   : > { %1797 = vmatpush3.bf16.xpose.msra.mxu1 %v954_v44  ;;  %1798 = vmatprep.mubr.msk.bf16.mxu1 %vm2280_vm0, %v2279_v26  ;;  %v2049_v44 = vld [vmem:[#allocation9 + $0x8] sm:$0xff]  }
 0x263   : > { %1802 = vmatprep.subr.bf16.mxu1 %v2279_v26 }
 0x269   : > { %1799 = vmatmul.mubr.bf16.vlgmr.msra.gmra.mrb[8].mxu1 %v950_v46  ;;  %v2053_v46 = vld [vmem:[#allocation9 + $0x18] sm:$0xff]  }
 0x26a   : > { %1803 = vmatpush3.bf16.xpose.msra.mxu1 %v955_v47  ;;  %1804 = vmatprep.mubr.msk.bf16.mxu1 %vm2280_vm0, %v2279_v26  ;;  %v2054_v47 = vld [vmem:[#allocation9 + $0x60] sm:$0xff]  }
 0x26b   : > { %1808 = vmatprep.subr.bf16.mxu1 %v2279_v26 }
 0x271   : > { %1805 = vmatmul.mubr.bf16.vlgmr.msra.gmra.mrb[12].mxu1 %v951_v49  ;;  %v2056_v49 = vld [vmem:[#allocation9 + $0x68] sm:$0xff]  }
 0x272   : > { %1809 = vmatpush3.bf16.xpose.msra.mxu1 %v956_v50  ;;  %1810 = vmatprep.mubr.msk.bf16.mxu1 %vm2280_vm0, %v2279_v26  ;;  %v2057_v50 = vld [vmem:[#allocation9 + $0x28] sm:$0xff]  }
 0x273   : > { %1814 = vmatprep.subr.bf16.mxu1 %v2279_v26 }
 0x279   : > { %1811 = vmatmul.mubr.bf16.vlgmr.msra.gmra.mrb[16].mxu1 %v952_v53  ;;  %v2060_v53 = vld [vmem:[#allocation9 + $0x78] sm:$0xff]  }
 0x27a   : > { %1815 = vmatpush3.bf16.msra.mxu1 %v1171_v54  ;;  %1816 = vmatprep.mubr.msk.bf16.mxu1 %vm2280_vm0, %v2279_v26  ;;  %v2061_v54 = vld [vmem:[#allocation9 + $0x38] sm:$0xff]  }
 0x27b   : > { %1820 = vmatprep.subr.bf16.mxu1 %v2279_v26 }
 0x334   : > { %v995_v55 = vpop.f32.mrb[4].mxu1 }
 0x335   : > { %v1794_v56 = vpop.f32.mrb[5].mxu1  ;;  %v1122_v57 = vsel %vm1121_vm2, %v995_v55, -inf }
 0x336   : > { %1123 = vmax.xlane.f32.xlu0 %v1122_v57  ;;  %v998_v58 = vpop.f32.mrb[6].mxu1 }
 0x337   : > { %v1795_v59 = vpop.f32.mrb[7].mxu1 }
 0x338   : > { %v1351_v59 = vstv %s291_s25 }
 0x33c   : > { %v1035_v60 = vpop.f32.mrb[8].mxu1 }
 0x33d   : > { %v1800_v61 = vpop.f32.mrb[9].mxu1  ;;  %v1125_v62 = vsel %vm1121_vm2, %v1035_v60, -inf }
 0x33e   : > { %1126 = vmax.xlane.f32.xlu0 %v1125_v62  ;;  %v1038_v63 = vpop.f32.mrb[10].mxu1 }
 0x33f   : > { %v1801_v0 = vpop.f32.mrb[11].mxu1 }
 0x344   : > { %v1075_v1 = vpop.f32.mrb[12].mxu1 }
 0x345   : > { %v1806_v2 = vpop.f32.mrb[13].mxu1  ;;  %v1128_v3 = vsel %vm1121_vm2, %v1075_v1, -inf }
 0x346   : > { %1129 = vmax.xlane.f32.xlu1 %v1128_v3  ;;  %v1078_v4 = vpop.f32.mrb[14].mxu1 }
 0x347   : > { %v1807_v5 = vpop.f32.mrb[15].mxu1 }
 0x34c   : > { %v1115_v6 = vpop.f32.mrb[16].mxu1 }
 0x34d   : > { %v1812_v7 = vpop.f32.mrb[17].mxu1  ;;  %v1131_v8 = vsel %vm1121_vm2, %v1115_v6, -inf }
 0x34e   : > { %1132 = vmax.xlane.f32.xlu1 %v1131_v8  ;;  %v1118_v9 = vpop.f32.mrb[18].mxu1 }
 0x34f   : > { %v1813_v10 = vpop.f32.mrb[19].mxu1 }
 0x3c3   : > { %v1124_v11 = vpop.xlane.xlu0 %1123 }
 0x3c4   : > { %v1134_v12 = vsub.f32 %v995_v55, %v1124_v11 }
 0x3c6   : > { %v1138_v13 = vmul.f32 1.442695, %v1134_v12 }
 0x3c8   : > { %2062 = vpow2.f32 %v1138_v13 }
 0x3cb   : > { %v1127_v14 = vpop.xlane.xlu0 %1126 }
 0x3cc   : > { %v1135_v15 = vsub.f32 %v1035_v60, %v1127_v14 }
 0x3ce   : > { %v1140_v16 = vmul.f32 1.442695, %v1135_v15 }
 0x3d0   : > { %2064 = vpow2.f32 %v1140_v16 }
 0x3d2   : > { %v2063_v17 = vpop.eup %2062 }
 0x3d3   : > { %v1130_v18 = vpop.xlane.xlu1 %1129  ;;  %v1162_v19 = vpack.c.bf16 %v2063_v17, %v2063_v17  ;;  %v1146_v33 = vsel %vm1121_vm2, %v2063_v17, 0.0 }
 0x3d4   : > { %v1136_v23 = vsub.f32 %v1075_v1, %v1130_v18 }
 0x3d5   : > { %1817 = vmatmul.mubr.msk.bf16.vlgmr.msra.gmra.mrb[20].mxu1 %vm1121_vm2, %v1162_v19 }
 0x3d6   : > { %v1142_v25 = vmul.f32 1.442695, %v1136_v23  ;;  %1821 = vmatpush3.bf16.msra.mxu1 %v2550_v39  ;;  %1822 = vmatprep.mubr.msk.bf16.mxu1 %vm2280_vm0, %v2279_v26 }
 0x3d7   : > { %1826 = vmatprep.subr.bf16.mxu1 %v2279_v26 }
 0x3d8   : > { %2066 = vpow2.f32 %v1142_v25 }
 0x3da   : > { %v2065_v27 = vpop.eup %2064 }
 0x3db   : > { %v1133_v28 = vpop.xlane.xlu1 %1132  ;;  %v1149_v29 = vsel %vm1121_vm2, %v2065_v27, 0.0  ;;  %v1163_v30 = vpack.c.bf16 %v2065_v27, %v2065_v27 }
 0x3dc   : > { %v1137_v31 = vsub.f32 %v1115_v6, %v1133_v28  ;;  %1150 = vadd.xlane.f32.xlu0 %v1149_v29 }
 0x3dd   : > { %1823 = vmatmul.mubr.msk.bf16.vlgmr.msra.gmra.mrb[24].mxu1 %vm1121_vm2, %v1163_v30 }
 0x3de   : > { %v1144_v32 = vmul.f32 1.442695, %v1137_v31  ;;  %1827 = vmatpush3.bf16.msra.mxu1 %v2554_v41  ;;  %1828 = vmatprep.mubr.msk.bf16.mxu1 %vm2280_vm0, %v2279_v26  ;;  %v2047_v41 = vld [vmem:[#allocation9] sm:$0xff]  }
 0x3df   : > { %1832 = vmatprep.subr.bf16.mxu1 %v2279_v26  ;;  %1769 = vmatpush3.bf16.msra.mxu0 %v2047_v41 }
 0x3e0   : > { %2068 = vpow2.f32 %v1144_v32  ;;  %1147 = vadd.xlane.f32.xlu0 %v1146_v33  ;;  %1770 = vmatprep.subr.bf16.mxu0 %v2048_v43 }
 0x3e2   : > { %v2067_v34 = vpop.eup %2066 }
 0x3e3   : > { %v1164_v35 = vpack.c.bf16 %v2067_v34, %v2067_v34  ;;  %v1152_v39 = vsel %vm1121_vm2, %v2067_v34, 0.0  ;;  %1771 = vmatpush3.bf16.msra.mxu0 %v2049_v44 }
 0x3e5   : > { %1829 = vmatmul.mubr.msk.bf16.vlgmr.msra.gmra.mrb[28].mxu1 %vm1121_vm2, %v1164_v35 }
 0x3e6   : > { %1833 = vmatpush3.bf16.msra.mxu1 %v2557_v42  ;;  %1834 = vmatprep.mubr.msk.bf16.mxu1 %vm2280_vm0, %v2279_v26  ;;  %v2050_v42 = vld [vmem:[#allocation9 + $0x50] sm:$0xff]  }
 0x3e7   : > { %v2051_v26 = vld [vmem:[#allocation9 + $0x10] sm:$0xff]   ;;  %1772 = vmatprep.subr.bf16.mxu0 %v2050_v42 }
 0x3e8   : > { %1773 = vmatpush3.bf16.msra.mxu0 %v2051_v26 }
 0x3e9   : > { %1774 = vmatprep.subr.bf16.mxu0 %v2052_v45 }
 0x3ea   : > { %v2069_v36 = vpop.eup %2068 }
 0x3eb   : > { %v1155_v37 = vsel %vm1121_vm2, %v2069_v36, 0.0  ;;  %v1165_v38 = vpack.c.bf16 %v2069_v36, %v2069_v36 }
 0x3ec   : > { %1156 = vadd.xlane.f32.xlu1 %v1155_v37  ;;  %1775 = vmatpush3.bf16.msra.mxu0 %v2053_v46 }
 0x3ed   : > { %1835 = vmatmul.mubr.msk.bf16.vlgmr.msra.gmra.mrb[32].mxu1 %vm1121_vm2, %v1165_v38  ;;  %1776 = vmatprep.subr.bf16.mxu0 %v2054_v47 }
 0x3f0   : > { %1153 = vadd.xlane.f32.xlu1 %v1152_v39  ;;  %1777 = vmatpush3.bf16.msra.mxu0 %v2055_v48 }
 0x3f1   : > { %1778 = vmatprep.subr.bf16.mxu0 %v2056_v49 }
 0x3f4   : > { %1779 = vmatpush3.bf16.msra.mxu0 %v2057_v50 }
 0x3f5   : > { %1780 = vmatprep.subr.bf16.mxu0 %v2058_v51 }
 0x3f8   : > { %1781 = vmatpush3.bf16.msra.mxu0 %v2059_v52 }
 0x3f9   : > { %1782 = vmatprep.subr.bf16.mxu0 %v2060_v53 }
 0x3fc   : > { %1783 = vmatpush3.bf16.msra.mxu0 %v2061_v54 }
 0x469   : > { %v1151_v55 = vpop.xlane.xlu0 %1150 }
 0x46d   : > { %v1148_v56 = vpop.xlane.xlu0 %1147 }
 0x46e   : > { %2070 = vrcp.f32 %v1148_v56 }
 0x46f   : > { %2072 = vrcp.f32 %v1151_v55 }
 0x478   : > { %v2071_v58 = vpop.eup %2070 }
 0x479   : > { %v1157_v57 = vpop.xlane.xlu1 %1156  ;;  %v1352_v61 = vmul.f32 %v2071_v58, %v1351_v59  ;;  %v2073_v4 = vpop.eup %2072 }
 0x47a   : > { %v1353_v5 = vmul.f32 %v2073_v4, %v1351_v59 }
 0x47d   : > { %v1154_v60 = vpop.xlane.xlu1 %1153 }
 0x47e   : > { %2074 = vrcp.f32 %v1154_v60 }
 0x47f   : > { %2076 = vrcp.f32 %v1157_v57 }
 0x488   : > { %v2075_v12 = vpop.eup %2074 }
 0x489   : > { %v1354_v13 = vmul.f32 %v2075_v12, %v1351_v59  ;;  %v2077_v19 = vpop.eup %2076 }
 0x48a   : > { %v1355_v25 = vmul.f32 %v2077_v19, %v1351_v59 }
 0x4a8   : > { %v1207_v62 = vpop.f32.mrb[20].mxu1 }
 0x4a9   : > { %v1356_v63 = vmul.f32 %v1352_v61, %v1207_v62  ;;  %v1818_v0 = vpop.f32.mrb[21].mxu1 }
 0x4aa   : > { %v1210_v1 = vpop.f32.mrb[22].mxu1 }
 0x4ab   : > { %v1360_v2 = vadd.f32 %v1356_v63, %v2533_v20  ;;  %v1819_v3 = vpop.f32.mrb[23].mxu1 }
 0x4b0   : > { %v1253_v6 = vpop.f32.mrb[24].mxu1 }
 0x4b1   : > { %v1357_v7 = vmul.f32 %v1353_v5, %v1253_v6  ;;  %v1824_v8 = vpop.f32.mrb[25].mxu1 }
 0x4b2   : > { %v1256_v9 = vpop.f32.mrb[26].mxu1 }
 0x4b3   : > { %v1361_v10 = vadd.f32 %v1357_v7, %v2535_v21  ;;  %v1825_v11 = vpop.f32.mrb[27].mxu1 }
 0x4b8   : > { %v1299_v14 = vpop.f32.mrb[28].mxu1 }
 0x4b9   : > { %v1358_v15 = vmul.f32 %v1354_v13, %v1299_v14  ;;  %v1830_v16 = vpop.f32.mrb[29].mxu1 }
 0x4ba   : > { %v1302_v17 = vpop.f32.mrb[30].mxu1 }
 0x4bb   : > { %v1362_v20 = vadd.f32 %v1358_v15, %v2537_v22  ;;  %v1831_v18 = vpop.f32.mrb[31].mxu1 }
 0x4bd   : > { %v1364_v23 = vpack.c.bf16 %v1362_v20, %v1360_v2 }
 0x4c0   : > { %v1345_v27 = vpop.f32.mrb[32].mxu1 }
 0x4c1   : > { %v1359_v28 = vmul.f32 %v1355_v25, %v1345_v27  ;;  %v1836_v29 = vpop.f32.mrb[33].mxu1 }
 0x4c2   : > { %v1348_v30 = vpop.f32.mrb[34].mxu1 }
 0x4c3   : > { %v1363_v21 = vadd.f32 %v1359_v28, %v2541_v24  ;;  %v1837_v31 = vpop.f32.mrb[35].mxu1 }
 0x4c5   : > { %v1365_v32 = vpack.c.bf16 %v1363_v21, %v1361_v10 }
 0x4c7   : > { %1494 = vmatprep.mubr.bf16.mxu0 %v1365_v32 }
 0x4c8   : > { %1495 = vmatmul.mubr.bf16.vlgmr.msra.gmra.mrb[8].mxu0 %v1364_v23 }
 0x59b   : > { %v1784_v33 = vpop.f32.mrb[8].mxu0 }
 0x59c   : > { %v1785_v22 = vpop.f32.mrb[9].mxu0 }
 0x59d   : > { %v1786_v34 = vadd.f32 %v1785_v22, %v1784_v33  ;;  %v1787_v35 = vpop.f32.mrb[10].mxu0 }
 0x59e   : > { %v1788_v36 = vpop.f32.mrb[11].mxu0 }
 0x59f   : > { %v1789_v37 = vadd.f32 %v1788_v36, %v1787_v35 }
 0x5a1   : > { %v1750_v24 = vpack.c.bf16 %v1789_v37, %v1786_v34 }
 0x5a3   : > { %1751 = vst [vmem:[%s287_s17] sm:$0xff] %v1750_v24  }
 0x5a4   : > { %2205 = shalt.err (!%p2202_p4)
}
 0x5a5   : > { %s2206_s24 = scalar_lea.hbm %s2609_s15, 128  ;;  %s2210_s28 = scalar_lea.hbm %s2658_s5, 256 }
 0x5a6   : > { %p2207_p9 = scmp.ne.s32.totalorder %s2609_s15, %s2206_s24  ;;  %p2211_p8 = scmp.lt.u32.totalorder %s2609_s15, %s2658_s5 }
 0x5a7   : > { %p2212_p13 = scmp.lt.u32.totalorder %s2210_s28, %s2206_s24  ;;  %p2214_p10 = scmp.lt.u32.totalorder %s2206_s24, %s2609_s15 }
 0x5a8   : > { %p2208_p0 = pnand %p2207_p9, %p2462_p5 }
 0x5a9   : > { %p2213_p6 = por %p2212_p13, %p2211_p8 }
 0x5aa   : > { %p2209_p11 = pneg %p2208_p0 }
 0x5ab   : > { %p2215_p3 = por %p2214_p10, %p2213_p6 }
 0x5ad   : > { %p2216_p7 = pnand %p2215_p3, %p2209_p11 }
 0x5af   : > { %2219 = shalt.err (!%p2216_p7)
}
 0x5b0   : > { %s2282_s17 = smov 64   ;;  %s2283_s29 = smov 4  }
 0x5b1   : > { %1852 = dma.vmem_to_hbm [thread:$0]  (%p2462_p5), %s2604_s18, 128, %s2609_s15, %s1508_s11, %s2282_s17, %s2282_s17, %s2283_s29  }
 0x5b2 PF: > { %s1536_s14 = sand.u32 1, %s2254_s20   ;;  %p2676_p12 = scmp.ne.s32.totalorder %s2663_s26, 0 }
 0x5b3   : > { %p2677_p1 = scmp.ge.s32.totalorder %s2266_s23, 2  ;;  %s1537_s13 = scalar_lea.sflag [#allocation5], %s1536_s14 }
 0x5b5   : > { %p1869_p2 = pnand %p2677_p1, %p2676_p12 }
 0x5b7   : > { %2249 = dma.done.wait (!%p1869_p2), %s1537_s13, 128  }
 0x5b8   : > { %2251 = vsyncadd (!%p1869_p2), %s1537_s13, 4294967168  ;;  %p21_p4 = scmp.ge.s32.totalorder %s2448_s19, 4   ;;  %s2678_s20 = smov %s2258_s21 }
 0x5b9   : > { %s2679_s21 = smov %s2262_s22  ;;  %s2680_s22 = smov %s2458_s8 }
 0x5ba   : > { %s2681_s23 = smov %s2448_s19  ;;  %23 = sbr.rel (!%p21_p4) target bundleno = 9 (0x9), region = 97 }
 0x5c1   :  { %1542 = vsyncpa [#allocation4], 1 }
 0x5c2   :  { %1544 = vsyncpa [#allocation4 + $0x1], 1 }
 0x5c3   :  { %1545 = vsyncpa [#allocation7], 1 }
 0x5c4   :  { %1546 = vsyncpa [#allocation10], 1 }
 0x5c5   :  { %1547 = vsyncpa [#allocation5], 1 }
 0x5c6   :  { %1549 = vsyncpa [#allocation5 + $0x1], 1 }

</bundles_post_ra>
